<compile_context>
chip_gen: v5e
topology: v5e:2x2
jax: 0.10.0
libtpu: 0.0.40
codegen_flags: <defaults>
</compile_context>

<pallas_src>
import functools

import jax
import jax.numpy as jnp
from jax.experimental import pallas as pl
from jax.experimental.pallas import tpu as pltpu

KERNEL_NUM = 50
KERNEL_SIZES = (3, 5)
KMAX = max(KERNEL_SIZES)          # 5
EMBED_DIM = 100
OUT_W = 128                       # lane-padded output width (2*KERNEL_NUM -> 128)


def _round_up(n, m):
    return (n + m - 1) // m * m


def _attitude_cnn_kernel(x_ref, w_ref, b_ref, o_ref, *, t3, t5):
    """One grid step over TB batch rows.

    x_ref: (TB, Lp, E)       zero-padded input tile
    w_ref: (KMAX*E, OUT_W)   fused conv3+conv5 weights (resident across steps)
    b_ref: (1, OUT_W)        fused bias
    o_ref: (TB, OUT_W)       lane-dense output slab
    """
    TB, Lp, E = x_ref.shape
    T = Lp - KMAX + 1                      # time grid; multiple of 8 by construction

    x = x_ref[...]
    # im2col: concatenate the KMAX time-shifted views along the lane axis.
    windows = jnp.concatenate(
        [x[:, dt:dt + T, :] for dt in range(KMAX)], axis=-1)       # (TB, T, KMAX*E)

    # Single fused MXU matmul: (TB*T, KMAX*E) @ (KMAX*E, OUT_W).
    scores = jnp.dot(windows.reshape(TB * T, KMAX * E), w_ref[...],
                     preferred_element_type=jnp.float32)
    scores = scores.reshape(TB, T, OUT_W)

    # Mask time positions that only exist because of zero padding:
    #   conv3 columns [0, 50)  are valid for t < t3
    #   conv5 columns [50,100) (and the zero lane-padding) for t < t5.
    t_idx = jax.lax.broadcasted_iota(jnp.int32, (T, OUT_W), 0)
    c_idx = jax.lax.broadcasted_iota(jnp.int32, (T, OUT_W), 1)
    limit = jnp.where(c_idx < KERNEL_NUM, t3, t5)
    neg = jnp.where(t_idx < limit, 0.0, -1e30).astype(jnp.float32)
    scores = scores + neg[None, :, :]

    pooled = jnp.max(scores, axis=1)                               # (TB, OUT_W)
    # bias + ReLU after the max: max_t relu(s_t + b) == relu(max_t s_t + b).
    # TODO(synk): Dropout(p=0.5) is identity in eval mode; a training-mode mask
    # would need pltpu.prng_seed/prng_random_bits.
    o_ref[...] = jnp.maximum(pooled + b_ref[...], 0.0)


def attitude_cnn_forward(x, w3, b3, w5, b5, *, block_b=256):
    """x: (B, L, E) float32 -> (B, 2*KERNEL_NUM) float32.

    w3: (3, E, K), w5: (5, E, K)   (PyTorch weight (K,1,ks,E) pre-transposed)
    b3, b5: (1, K)
    """
    B, L, E = x.shape
    assert E == EMBED_DIM
    assert L >= max(KERNEL_SIZES), "sequence must cover the widest conv kernel"
    K = KERNEL_NUM

    T3 = L - KERNEL_SIZES[0] + 1           # valid positions for the 3-wide conv
    T5 = L - KERNEL_SIZES[1] + 1           # valid positions for the 5-wide conv
    T = _round_up(T3, 8)                   # sublane-aligned time-position grid
    Lp = T + KMAX - 1                      # padded sequence length

    # Batch tiling: whole batch in one step when small; 256-row tiles otherwise.
    if B <= block_b:
        TB, Bp = B, B
    else:
        TB = block_b                       # multiple of 8 -> sublane-aligned blocks
        Bp = _round_up(B, TB)

    # Wrapper-side (one-time XLA) padding and weight packing — never in-kernel.
    x_pad = jnp.pad(x.astype(jnp.float32),
                    ((0, Bp - B), (0, Lp - L), (0, 0)))

    # Fused weight (KMAX*E, OUT_W): cols [0,K)=conv3 (taps 3,4 zeroed),
    # cols [K,2K)=conv5, cols [2K,128) zero padding.
    wf = jnp.zeros((KMAX, EMBED_DIM, OUT_W), jnp.float32)
    wf = wf.at[:KERNEL_SIZES[0], :, :K].set(w3.astype(jnp.float32))
    wf = wf.at[:, :, K:2 * K].set(w5.astype(jnp.float32))
    wf = wf.reshape(KMAX * EMBED_DIM, OUT_W)
    bf = jnp.zeros((1, OUT_W), jnp.float32)
    bf = bf.at[0, :K].set(b3.reshape(-1)).at[0, K:2 * K].set(b5.reshape(-1))

    kernel = functools.partial(_attitude_cnn_kernel, t3=T3, t5=T5)

    out = pl.pallas_call(
        kernel,
        out_shape=jax.ShapeDtypeStruct((Bp, OUT_W), jnp.float32),
        grid_spec=pltpu.PrefetchScalarGridSpec(
            num_scalar_prefetch=0,
            grid=(Bp // TB,),
            in_specs=[
                pl.BlockSpec((TB, Lp, EMBED_DIM), lambda b: (b, 0, 0)),   # x
                pl.BlockSpec((KMAX * EMBED_DIM, OUT_W), lambda b: (0, 0)),  # fused W
                pl.BlockSpec((1, OUT_W), lambda b: (0, 0)),                 # fused b
            ],
            out_specs=pl.BlockSpec((TB, OUT_W), lambda b: (b, 0)),
        ),
        compiler_params=pltpu.CompilerParams(
            dimension_semantics=("parallel",)),   # megacore-shardable batch axis
    )(x_pad, wf, bf)

    return out[:B, :2 * K]


def init_params(key):
    """Deterministic init matching nn.Conv2d parameter shapes.

    PyTorch conv11.weight: (50, 1, 3, 100), conv12.weight: (50, 1, 5, 100).
    Stored pre-transposed to (ksize, E, 50) for the kernel matmuls.
    """
    k1, k2, k3, k4 = jax.random.split(key, 4)
    params = {}
    for name, ks, kw, kb in (("3", KERNEL_SIZES[0], k1, k2),
                             ("5", KERNEL_SIZES[1], k3, k4)):
        fan_in = 1 * ks * EMBED_DIM
        bound = 1.0 / jnp.sqrt(fan_in)
        w_torch = jax.random.uniform(
            kw, (KERNEL_NUM, 1, ks, EMBED_DIM),
            minval=-bound, maxval=bound, dtype=jnp.float32)
        b = jax.random.uniform(
            kb, (KERNEL_NUM,), minval=-bound, maxval=bound, dtype=jnp.float32)
        params["w" + name] = jnp.transpose(w_torch[:, 0], (1, 2, 0))  # (ks, E, K)
        params["b" + name] = b.reshape(1, KERNEL_NUM)
    return params


def reference_forward(x, w3, b3, w5, b5):
    """Pure-JAX reference for correctness checking."""
    def one(wk, bk, ks):
        T = x.shape[1] - ks + 1
        acc = jnp.zeros((x.shape[0], T, KERNEL_NUM), jnp.float32)
        for dt in range(ks):
            acc = acc + jnp.einsum("ble,ek->blk", x[:, dt:dt + T, :], wk[dt])
        acc = jax.nn.relu(acc + bk.reshape(1, 1, KERNEL_NUM))
        return jnp.max(acc, axis=1)
    return jnp.concatenate([one(w3, b3, KERNEL_SIZES[0]),
                            one(w5, b5, KERNEL_SIZES[1])], axis=1)


if __name__ == "__main__":
    key = jax.random.PRNGKey(0)
    kx, kp = jax.random.split(key)

    B, L = 2, 8                    # small demo; embed_dim fixed at 100 by the module
    x = jax.random.normal(kx, (B, L, EMBED_DIM), dtype=jnp.float32)
    p = init_params(kp)

    out = attitude_cnn_forward(x, p["w3"], p["b3"], p["w5"], p["b5"])
    out = jax.block_until_ready(out)

    ref = reference_forward(x, p["w3"], p["b3"], p["w5"], p["b5"])
    assert out.shape == (B, 2 * KERNEL_NUM), out.shape
    assert jnp.allclose(out, ref, atol=1e-4, rtol=1e-4), \
        float(jnp.max(jnp.abs(out - ref)))

    print("KERNEL_OK")
</pallas_src>

<mosaic_0001>
module attributes {stable_mosaic.version = 11 : i64} {
  func.func @_attitude_cnn_kernel(%arg0: i32, %arg1: memref<2x12x100xf32, #tpu.memory_space<vmem>>, %arg2: memref<500x128xf32, #tpu.memory_space<vmem>>, %arg3: memref<1x128xf32, #tpu.memory_space<vmem>>, %arg4: memref<2x128xf32, #tpu.memory_space<vmem>>) attributes {dimension_semantics = [#tpu.dimension_semantics<parallel>], iteration_bounds = array<i64: 1>, scalar_prefetch = 0 : i64, scratch_operands = 0 : i64, tpu.core_type = #tpu.core_type<tc>, window_params = [{transform_indices = @transform_0, window_bounds = array<i64: 2, 12, 100>}, {pipeline_mode = #tpu.pipeline_mode<synchronous>, transform_indices = @transform_1, window_bounds = array<i64: 500, 128>}, {pipeline_mode = #tpu.pipeline_mode<synchronous>, transform_indices = @transform_2, window_bounds = array<i64: 1, 128>}, {transform_indices = @transform_3, window_bounds = array<i64: 2, 128>}]} {
    %c0 = arith.constant 0 : index
    %c0_0 = arith.constant 0 : index
    %c0_1 = arith.constant 0 : index
    %0 = vector.load %arg1[%c0, %c0_0, %c0_1] : memref<2x12x100xf32, #tpu.memory_space<vmem>>, vector<2x12x100xf32>
    %1 = vector.extract_strided_slice %0 {offsets = [0, 0, 0], sizes = [2, 8, 100], strides = [1, 1, 1]} : vector<2x12x100xf32> to vector<2x8x100xf32>
    %2 = vector.extract_strided_slice %0 {offsets = [0, 1, 0], sizes = [2, 8, 100], strides = [1, 1, 1]} : vector<2x12x100xf32> to vector<2x8x100xf32>
    %3 = vector.extract_strided_slice %0 {offsets = [0, 2, 0], sizes = [2, 8, 100], strides = [1, 1, 1]} : vector<2x12x100xf32> to vector<2x8x100xf32>
    %4 = vector.extract_strided_slice %0 {offsets = [0, 3, 0], sizes = [2, 8, 100], strides = [1, 1, 1]} : vector<2x12x100xf32> to vector<2x8x100xf32>
    %5 = vector.extract_strided_slice %0 {offsets = [0, 4, 0], sizes = [2, 8, 100], strides = [1, 1, 1]} : vector<2x12x100xf32> to vector<2x8x100xf32>
    %6 = tpu.concatenate %1, %2, %3, %4, %5 in 2 : vector<2x8x100xf32>, vector<2x8x100xf32>, vector<2x8x100xf32>, vector<2x8x100xf32>, vector<2x8x100xf32> -> vector<2x8x500xf32>
    %7 = vector.shape_cast %6 : vector<2x8x500xf32> to vector<16x500xf32>
    %c0_2 = arith.constant 0 : index
    %c0_3 = arith.constant 0 : index
    %8 = vector.load %arg2[%c0_2, %c0_3] : memref<500x128xf32, #tpu.memory_space<vmem>>, vector<500x128xf32>
    %cst = arith.constant dense<0.000000e+00> : vector<16x128xf32>
    %9 = tpu.matmul %7, %8, %cst {dimension_numbers = #tpu.dot_dimension_numbers<[1], [0], [0], [1], [0, 0, 1, 1], [], []>} : vector<16x500xf32>, vector<500x128xf32>, vector<16x128xf32> -> vector<16x128xf32>
    %10 = vector.shape_cast %9 : vector<16x128xf32> to vector<2x8x128xf32>
    %11 = tpu.iota {dimensions = array<i32: 0>} : vector<8x128xi32>
    %12 = tpu.iota {dimensions = array<i32: 1>} : vector<8x128xi32>
    %c50_i32 = arith.constant 50 : i32
    %13 = vector.broadcast %c50_i32 : i32 to vector<8x128xi32>
    %14 = arith.cmpi slt, %12, %13 : vector<8x128xi32>
    %c6_i32 = arith.constant 6 : i32
    %c4_i32 = arith.constant 4 : i32
    %15 = vector.broadcast %c6_i32 : i32 to vector<8x128xi32>
    %16 = vector.broadcast %c4_i32 : i32 to vector<8x128xi32>
    %17 = arith.select %14, %15, %16 : vector<8x128xi1>, vector<8x128xi32>
    %18 = arith.cmpi slt, %11, %17 : vector<8x128xi32>
    %cst_4 = arith.constant 0.000000e+00 : f32
    %cst_5 = arith.constant -1.000000e+30 : f32
    %19 = vector.broadcast %cst_4 : f32 to vector<8x128xf32>
    %20 = vector.broadcast %cst_5 : f32 to vector<8x128xf32>
    %21 = arith.select %18, %19, %20 : vector<8x128xi1>, vector<8x128xf32>
    %22 = vector.shape_cast %21 : vector<8x128xf32> to vector<1x8x128xf32>
    %23 = vector.broadcast %22 : vector<1x8x128xf32> to vector<2x8x128xf32>
    %24 = arith.addf %10, %23 : vector<2x8x128xf32>
    %cst_6 = arith.constant dense<0xFF800000> : vector<2x128xf32>
    %25 = vector.multi_reduction <maximumf>, %24, %cst_6 [1] : vector<2x8x128xf32> to vector<2x128xf32>
    %c0_7 = arith.constant 0 : index
    %c0_8 = arith.constant 0 : index
    %26 = vector.load %arg3[%c0_7, %c0_8] : memref<1x128xf32, #tpu.memory_space<vmem>>, vector<1x128xf32>
    %27 = vector.broadcast %26 : vector<1x128xf32> to vector<2x128xf32>
    %28 = arith.addf %25, %27 : vector<2x128xf32>
    %cst_9 = arith.constant 0.000000e+00 : f32
    %29 = vector.broadcast %cst_9 : f32 to vector<2x128xf32>
    %30 = arith.maximumf %28, %29 : vector<2x128xf32>
    %c0_10 = arith.constant 0 : index
    %c0_11 = arith.constant 0 : index
    %31 = vector.load %arg4[%c0_10, %c0_11] : memref<2x128xf32, #tpu.memory_space<vmem>>, vector<2x128xf32>
    tpu.vector_store %arg4[%c0_10, %c0_11], %30 {strides = array<i32>} : memref<2x128xf32, #tpu.memory_space<vmem>>, vector<2x128xf32>,
    return
  }
  func.func @transform_0(%arg0: i32) -> (i32, i32, i32) {
    %c0_i32 = arith.constant 0 : i32
    %c0_i32_0 = arith.constant 0 : i32
    %c0_i32_1 = arith.constant 0 : i32
    return %arg0, %c0_i32, %c0_i32_0 : i32, i32, i32
  }
  func.func @transform_1(%arg0: i32) -> (i32, i32) {
    %c0_i32 = arith.constant 0 : i32
    %c0_i32_0 = arith.constant 0 : i32
    %c0_i32_1 = arith.constant 0 : i32
    return %c0_i32, %c0_i32_0 : i32, i32
  }
  func.func @transform_2(%arg0: i32) -> (i32, i32) {
    %c0_i32 = arith.constant 0 : i32
    %c0_i32_0 = arith.constant 0 : i32
    %c0_i32_1 = arith.constant 0 : i32
    return %c0_i32, %c0_i32_0 : i32, i32
  }
  func.func @transform_3(%arg0: i32) -> (i32, i32) {
    %c0_i32 = arith.constant 0 : i32
    %c0_i32_0 = arith.constant 0 : i32
    return %arg0, %c0_i32 : i32, i32
  }
}

</mosaic_0001>

<bundles_post_ra>
// kernel: tpu_custom_call.1
= control target key start
LH: loop header
LB: loop body
LE: loop exit
PB: predicated region body
PF: predicated region fallthrough
CT: control target
= control target key end

     0   :  { %8 = vsyncpa [#allocation3], 0  ;;  %s482_s0 = inlined_call_operand.vmem [shape: f32[2,12,100], index: 0, kind: input, shape index: {}]   ;;  %s483_s1 = inlined_call_operand.hbm [shape: f32[500,128], index: 1, kind: input, shape index: {}]   ;;  %s484_s2 = inlined_call_operand.vmem [shape: f32[1,128], index: 2, kind: input, shape index: {}]   ;;  %s485_s3 = inlined_call_operand.hbm [shape: f32[2,128], index: 3, kind: output, shape index: {}]  }
   0x1   :  { %9 = vsyncpa [#allocation4], 0  ;;  %s16_s14 = sshll.u32 %s483_s1, 4  ;;  %s388_s15 = smov [#allocation2]   ;;  %s17_s14 = int_to_ptr.hbm [resolvable:$true] %s16_s14 }
   0x2   :  { %s18_s16 = sshll.u32 %s388_s15, 4  ;;  %s389_s17 = smov 128   ;;  %s19_s16 = int_to_ptr.vmem [resolvable:$true] %s18_s16 }
   0x3   :  { %s390_s18 = smov 8  }
   0x4   :  { %24 = dma.hbm_to_vmem [thread:$0]  %s17_s14, 8064, %s19_s16, [#allocation3], %s389_s17, %s389_s17, %s390_s18  }
   0x5   :  { %384 = dma.done.wait [#allocation3], 8064  }
   0x6   :  { %385 = vsyncadd [#allocation3], 4294959232  ;;  %v424_v0 = vld [vmem:[%s482_s0] sm:$0xff]  ;;  %v32_v1 = vld [vmem:[%s482_s0 + $0x8] sm:$0xf]  ;;  %vm78_vm0 = vcmask 1043456  }
   0x7   :  { %vm52_vm1 = vcmask 1045504   ;;  %v79_v2 = vrot.slane %v424_v0, 4  ;;  %v80_v3 = vrot.slane %v32_v1, 4  ;;  %v53_v4 = vrot.slane %v424_v0, 2  ;;  %v434_v6 = vld [vmem:[%s482_s0 + $0x10] sm:$0xff]  ;;  %v118_v8 = vld [vmem:[#allocation2 + $0x78] sm:$0xff] }
   0x8   :  { %v54_v5 = vrot.slane %v32_v1, 2  ;;  %v439_v7 = vld [vmem:[%s482_s0 + $0x18] sm:$0xf]  ;;  %176 = vmatpush.msra.mxu0 %v118_v8  ;;  %v117_v13 = vld [vmem:[#allocation2 + $0x70] sm:$0xff]  ;;  %s391_s26 = smov 16   ;;  %s392_s27 = smov 72  }
   0x9   :  { %v134_v9 = vld [vmem:[#allocation2 + $0xf8] sm:$0xff]  ;;  %v81_v10 = vsel %vm78_vm0, %v79_v2, %v80_v3  ;;  %v133_v14 = vld [vmem:[#allocation2 + $0xf0] sm:$0xff]  ;;  %v66_v15 = vrot.slane %v424_v0, 3  ;;  %v67_v16 = vrot.slane %v32_v1, 3  ;;  %v116_v19 = vld [vmem:[#allocation2 + $0x68] sm:$0xff]  ;;  %v40_v20 = vrot.slane %v424_v0, 1 }
   0xa   :  { %v55_v11 = vsel %vm52_vm1, %v53_v4, %v54_v5  ;;  %199 = vmatpush.msra.mxu1 %v134_v9  ;;  %v150_v12 = vld [vmem:[#allocation2 + $0x178] sm:$0xff]  ;;  %85 = vrot.lane.b32.xlu1 %v81_v10, %s391_s26  ;;  %v149_v17 = vld [vmem:[#allocation2 + $0x170] sm:$0xff]  ;;  %v41_v21 = vrot.slane %v32_v1, 1  ;;  %v56_v22 = vrot.slane %v434_v6, 2  ;;  %v57_v23 = vrot.slane %v439_v7, 2  ;;  %v132_v24 = vld [vmem:[#allocation2 + $0xe8] sm:$0xff] }
   0xb   :  { %59 = vrot.lane.b32.xlu0 %v55_v11, %s392_s27  ;;  %v165_v18 = vld [vmem:[#allocation2 + $0x1f0] sm:$0xf]  ;;  %222 = vmatpush.msra.mxu2 %v150_v12  ;;  %vm65_vm2 = vcmask 1044480   ;;  %vm39_vm3 = vcmask 1046528   ;;  %v148_v25 = vld [vmem:[#allocation2 + $0x168] sm:$0xff]  ;;  %v115_v28 = vld [vmem:[#allocation2 + $0x60] sm:$0xff] }
   0xc   :  { %177 = vmatpush.msra.mxu0 %v117_v13  ;;  %200 = vmatpush.msra.mxu1 %v133_v14  ;;  %v164_v26 = vld [vmem:[#allocation2 + $0x1e8] sm:$0xff]  ;;  %v58_v27 = vsel %vm52_vm1, %v56_v22, %v57_v23  ;;  %v131_v29 = vld [vmem:[#allocation2 + $0xe0] sm:$0xff]  ;;  %v68_v32 = vsel %vm65_vm2, %v66_v15, %v67_v16  ;;  %v42_v33 = vsel %vm39_vm3, %v40_v20, %v41_v21  ;;  %v69_v34 = vrot.slane %v434_v6, 3  ;;  %v114_v36 = vld [vmem:[#allocation2 + $0x58] sm:$0xff]  ;;  %s393_s0 = smov 44   ;;  %s394_s28 = smov 100  }
   0xd   :  { %322 = vmatpush.msk.msra.mxu3 %vm78_vm0, %v165_v18  ;;  %223 = vmatpush.msra.mxu2 %v149_v17  ;;  %v147_v30 = vld [vmem:[#allocation2 + $0x160] sm:$0xff]  ;;  %v70_v35 = vrot.slane %v439_v7, 3  ;;  %v130_v37 = vld [vmem:[#allocation2 + $0xd8] sm:$0xff]  ;;  %v82_v40 = vrot.slane %v434_v6, 4  ;;  %v113_v41 = vld [vmem:[#allocation2 + $0x50] sm:$0xff]  ;;  %v83_v43 = vrot.slane %v439_v7, 4 }
   0xe   :  { %178 = vmatpush.msra.mxu0 %v116_v19  ;;  %61 = vrot.lane.b32.xlu2 %v58_v27, %s392_s27  ;;  %v163_v31 = vld [vmem:[#allocation2 + $0x1e0] sm:$0xff]  ;;  %v146_v38 = vld [vmem:[#allocation2 + $0x158] sm:$0xff]  ;;  %v129_v42 = vld [vmem:[#allocation2 + $0xd0] sm:$0xff]  ;;  %v43_v44 = vrot.slane %v434_v6, 1  ;;  %v44_v45 = vrot.slane %v439_v7, 1  ;;  %vm91_vm4 = vcmask 818176  }
   0xf   :  { %201 = vmatpush.msra.mxu1 %v132_v24  ;;  %224 = vmatpush.msra.mxu2 %v148_v25  ;;  %v162_v39 = vld [vmem:[#allocation2 + $0x1d8] sm:$0xff]  ;;  %v71_v46 = vsel %vm65_vm2, %v69_v34, %v70_v35  ;;  %v145_v47 = vld [vmem:[#allocation2 + $0x150] sm:$0xff]  ;;  %v112_v49 = vld [vmem:[#allocation2 + $0x48] sm:$0xff]  ;;  %v84_v54 = vsel %vm78_vm0, %v82_v40, %v83_v43  ;;  %vm94_vm5 = vcmask 588800   ;;  %vm97_vm6 = vcmask 359424   ;;  %s397_s4 = smov [#allocation5]  }
  0x10   :  { %247 = vmatpush.msra.mxu3 %v164_v26  ;;  %179 = vmatpush.msra.mxu0 %v115_v28  ;;  %v161_v48 = vld [vmem:[#allocation2 + $0x1d0] sm:$0xff]  ;;  %v128_v50 = vld [vmem:[#allocation2 + $0xc8] sm:$0xff]  ;;  %v111_v53 = vld [vmem:[#allocation2 + $0x40] sm:$0xff]  ;;  %v45_v55 = vsel %vm39_vm3, %v43_v44, %v44_v45  ;;  %vm100_vm7 = vcmask 130048   ;;  %vm166_vm8 = vcmask 949248   ;;  %v268_v44 = vlaneseq  ;;  %s310_s5 = sshll.u32 %s397_s4, 4  ;;  %s311_s5 = int_to_ptr.vmem [resolvable:$true] %s310_s5 }
  0x11   :  { %202 = vmatpush.msra.mxu1 %v131_v29  ;;  %225 = vmatpush.msra.mxu2 %v147_v30  ;;  %v144_v51 = vld [vmem:[#allocation2 + $0x148] sm:$0xff]  ;;  %v127_v56 = vld [vmem:[#allocation2 + $0xc0] sm:$0xff]  ;;  %v110_v59 = vld [vmem:[#allocation2 + $0x38] sm:$0xff]  ;;  %s312_s8 = sshll.u32 %s485_s3, 4  ;;  %vm301_vm11 = vcmask 1041409   ;;  %s313_s8 = int_to_ptr.hbm [resolvable:$true] %s312_s8 }
  0x12   :  { %248 = vmatpush.msra.mxu3 %v163_v31  ;;  %46 = vrot.lane.b32.xlu1 %v42_v33, %s394_s28  ;;  %v160_v52 = vld [vmem:[#allocation2 + $0x1c8] sm:$0xff]  ;;  %v143_v57 = vld [vmem:[#allocation2 + $0x140] sm:$0xff]  ;;  %v126_v60 = vld [vmem:[#allocation2 + $0xb8] sm:$0xff]  ;;  %v271_v45 = vand.u32 127, %v268_v44 }
  0x13   :  { %72 = vrot.lane.b32.xlu0 %v68_v32, %s393_s0  ;;  %180 = vmatpush.msra.mxu0 %v114_v36  ;;  %v159_v58 = vld [vmem:[#allocation2 + $0x1c0] sm:$0xff]  ;;  %v142_v61 = vld [vmem:[#allocation2 + $0x138] sm:$0xff]  ;;  %v109_v63 = vld [vmem:[#allocation2 + $0x30] sm:$0xff] }
  0x14   :  { %203 = vmatpush.msra.mxu1 %v130_v37  ;;  %226 = vmatpush.msra.mxu2 %v146_v38  ;;  %v158_v62 = vld [vmem:[#allocation2 + $0x1b8] sm:$0xff]  ;;  %v125_v1 = vld [vmem:[#allocation2 + $0xb0] sm:$0xff]  ;;  %v108_v4 = vld [vmem:[#allocation2 + $0x28] sm:$0xff]  ;;  %vm272_vm9 = vcmp.lt.s32.totalorder %v271_v45, 50 }
  0x15   :  { %249 = vmatpush.msra.mxu3 %v162_v39  ;;  %181 = vmatpush.msra.mxu0 %v113_v41  ;;  %v141_v2 = vld [vmem:[#allocation2 + $0x130] sm:$0xff]  ;;  %v124_v5 = vld [vmem:[#allocation2 + $0xa8] sm:$0xff]  ;;  %v107_v9 = vld [vmem:[#allocation2 + $0x20] sm:$0xff] }
  0x16   :  { %204 = vmatpush.msra.mxu1 %v129_v42  ;;  %74 = vrot.lane.b32.xlu2 %v71_v46, %s393_s0  ;;  %v157_v3 = vld [vmem:[#allocation2 + $0x1b0] sm:$0xff]  ;;  %v140_v7 = vld [vmem:[#allocation2 + $0x128] sm:$0xff]  ;;  %v123_v10 = vld [vmem:[#allocation2 + $0xa0] sm:$0xff] }
  0x17   :  { %227 = vmatpush.msra.mxu2 %v145_v47  ;;  %250 = vmatpush.msra.mxu3 %v161_v48  ;;  %v156_v8 = vld [vmem:[#allocation2 + $0x1a8] sm:$0xff]  ;;  %v139_v11 = vld [vmem:[#allocation2 + $0x120] sm:$0xff]  ;;  %v106_v13 = vld [vmem:[#allocation2 + $0x18] sm:$0xff]  ;;  %v269_v48 = vshrl.u32 %v268_v44, 7 }
  0x18   :  { %182 = vmatpush.msra.mxu0 %v112_v49  ;;  %205 = vmatpush.msra.mxu1 %v128_v50  ;;  %v155_v12 = vld [vmem:[#allocation2 + $0x1a0] sm:$0xff]  ;;  %v122_v14 = vld [vmem:[#allocation2 + $0x98] sm:$0xff]  ;;  %v105_v17 = vld [vmem:[#allocation2 + $0x10] sm:$0xff]  ;;  %v395_v49 = vmov 4  }
  0x19   :  { %228 = vmatpush.msra.mxu2 %v144_v51  ;;  %251 = vmatpush.msra.mxu3 %v160_v52  ;;  %v138_v15 = vld [vmem:[#allocation2 + $0x118] sm:$0xff]  ;;  %v121_v18 = vld [vmem:[#allocation2 + $0x90] sm:$0xff]  ;;  %v104_v21 = vld [vmem:[#allocation2 + $0x8] sm:$0xff]  ;;  %v273_v50 = vsel %vm272_vm9, 6, %v395_v49 }
  0x1a   :  { %183 = vmatpush.msra.mxu0 %v111_v53  ;;  %48 = vrot.lane.b32.xlu1 %v45_v55, %s394_s28  ;;  %v154_v16 = vld [vmem:[#allocation2 + $0x198] sm:$0xff]  ;;  %v137_v19 = vld [vmem:[#allocation2 + $0x110] sm:$0xff]  ;;  %v120_v22 = vld [vmem:[#allocation2 + $0x88] sm:$0xff]  ;;  %vm274_vm10 = vcmp.lt.s32.totalorder %v269_v48, %v273_v50 }
  0x1b   :  { %87 = vrot.lane.b32.xlu0 %v84_v54, %s391_s26  ;;  %206 = vmatpush.msra.mxu1 %v127_v56  ;;  %v153_v20 = vld [vmem:[#allocation2 + $0x190] sm:$0xff]  ;;  %v136_v23 = vld [vmem:[#allocation2 + $0x108] sm:$0xff]  ;;  %v103_v25 = vld [vmem:[#allocation2] sm:$0xff]  ;;  %v396_v54 = vmov -1e+30  }
  0x1c   :  { %229 = vmatpush.msra.mxu2 %v143_v57  ;;  %252 = vmatpush.msra.mxu3 %v159_v58  ;;  %v152_v24 = vld [vmem:[#allocation2 + $0x188] sm:$0xff]  ;;  %v119_v26 = vld [vmem:[#allocation2 + $0x80] sm:$0xff]  ;;  %v275_v55 = vsel %vm274_vm10, 0.0, %v396_v54 }
  0x1d   :  { %184 = vmatpush.msra.mxu0 %v110_v59  ;;  %207 = vmatpush.msra.mxu1 %v126_v60  ;;  %v135_v27 = vld [vmem:[#allocation2 + $0x100] sm:$0xff] }
  0x1e   :  { %230 = vmatpush.msra.mxu2 %v142_v61  ;;  %253 = vmatpush.msra.mxu3 %v158_v62  ;;  %v151_v28 = vld [vmem:[#allocation2 + $0x180] sm:$0xff] }
  0x1f   :  { %185 = vmatpush.msra.mxu0 %v109_v63  ;;  %208 = vmatpush.msra.mxu1 %v125_v1 }
  0x20   :  { %231 = vmatpush.msra.mxu2 %v141_v2  ;;  %254 = vmatpush.msra.mxu3 %v157_v3 }
  0x21   :  { %186 = vmatpush.msra.mxu0 %v108_v4  ;;  %209 = vmatpush.msra.mxu1 %v124_v5 }
  0x22   :  { %232 = vmatpush.msra.mxu2 %v140_v7  ;;  %255 = vmatpush.msra.mxu3 %v156_v8 }
  0x23   :  { %187 = vmatpush.msra.mxu0 %v107_v9  ;;  %210 = vmatpush.msra.mxu1 %v123_v10 }
  0x24   :  { %233 = vmatpush.msra.mxu2 %v139_v11  ;;  %256 = vmatpush.msra.mxu3 %v155_v12 }
  0x25   :  { %188 = vmatpush.msra.mxu0 %v106_v13  ;;  %211 = vmatpush.msra.mxu1 %v122_v14 }
  0x26   :  { %234 = vmatpush.msra.mxu2 %v138_v15  ;;  %257 = vmatpush.msra.mxu3 %v154_v16  ;;  %v335_v15 = vld [vmem:[%s484_s2] ss:$0 sm:$0xff] }
  0x27   :  { %189 = vmatpush.msra.mxu0 %v105_v17  ;;  %212 = vmatpush.msra.mxu1 %v121_v18 }
  0x28   :  { %235 = vmatpush.msra.mxu2 %v137_v19  ;;  %258 = vmatpush.msra.mxu3 %v153_v20 }
  0x29   :  { %190 = vmatpush.msra.mxu0 %v104_v21  ;;  %213 = vmatpush.msra.mxu1 %v120_v22 }
  0x2a   :  { %236 = vmatpush.msra.mxu2 %v136_v23  ;;  %259 = vmatpush.msra.mxu3 %v152_v24 }
  0x2b   :  { %191 = vmatpush.msra.mxu0 %v103_v25  ;;  %214 = vmatpush.msra.mxu1 %v119_v26 }
  0x2c   :  { %237 = vmatpush.msra.mxu2 %v135_v27  ;;  %260 = vmatpush.msra.mxu3 %v151_v28 }
  0x68   :  { %v62_v31 = vpop.permute.xlu2 %61 }
  0x70   :  { %v75_v38 = vpop.permute.xlu2 %74 }
  0x71   :  { %v99_v43 = vsel %vm97_vm6, %v62_v31, %v75_v38 }
  0x7c   :  { %v86_v29 = vpop.permute.xlu1 %85 }
  0x7d   :  { %v60_v30 = vpop.permute.xlu0 %59 }
  0x84   :  { %v47_v33 = vpop.permute.xlu1 %46 }
  0x85   :  { %v73_v32 = vpop.permute.xlu0 %72  ;;  %v92_v34 = vsel %vm91_vm4, %v424_v0, %v47_v33  ;;  %v95_v35 = vsel %vm94_vm5, %v47_v33, %v60_v30 }
  0x86   :  { %v98_v36 = vsel %vm97_vm6, %v60_v30, %v73_v32  ;;  %v101_v37 = vsel %vm100_vm7, %v73_v32, %v86_v29  ;;  %192 = vmatmul.f32.vlgmr.msra.gmra.mxu0 %v92_v34  ;;  %215 = vmatmul.f32.vlgmr.msra.gmra.mxu1 %v95_v35 }
  0x87   :  { %238 = vmatmul.f32.vlgmr.msra.gmra.mxu2 %v98_v36  ;;  %323 = vmatmul.msk.f32.vlgmr.msra.gmra.mxu3 %vm166_vm8, %v101_v37 }
  0x8c   :  { %v49_v40 = vpop.permute.xlu1 %48 }
  0x8d   :  { %v88_v39 = vpop.permute.xlu0 %87  ;;  %v93_v41 = vsel %vm91_vm4, %v434_v6, %v49_v40  ;;  %v96_v42 = vsel %vm94_vm5, %v49_v40, %v62_v31 }
  0x8e   :  { %v102_v0 = vsel %vm100_vm7, %v75_v38, %v88_v39  ;;  %195 = vmatmul.f32.gmra.mxu0 %v93_v41  ;;  %218 = vmatmul.f32.gmra.mxu1 %v96_v42 }
  0x8f   :  { %241 = vmatmul.f32.gmra.mxu2 %v99_v43  ;;  %324 = vmatmul.msk.f32.gmra.mxu3 %vm166_vm8, %v102_v0 }
 0x103   :  { %v193_v46 = vpop.f32.mrf.mxu0  ;;  %v216_v47 = vpop.f32.mrf.mxu1 }
 0x104   :  { %v217_v6 = vadd.f32 %v216_v47, %v193_v46 }
 0x10a   :  { %v239_v51 = vpop.f32.mrf.mxu2  ;;  %v262_v52 = vpop.f32.mrf.mxu3 }
 0x10b   :  { %v240_v53 = vadd.f32 %v239_v51, %v217_v6  ;;  %v196_v57 = vpop.f32.mrf.mxu0  ;;  %v219_v58 = vpop.f32.mrf.mxu1 }
 0x10c   :  { %v220_v61 = vadd.f32 %v219_v58, %v196_v57 }
 0x10d   :  { %v263_v56 = vadd.f32 %v262_v52, %v240_v53 }
 0x10f   :  { %v276_v59 = vadd.f32 %v275_v55, %v263_v56 }
 0x111   :  { %v278_v60 = vrot.slane %v276_v59, 4 }
 0x112   :  { %v242_v62 = vpop.f32.mrf.mxu2  ;;  %v265_v2 = vpop.f32.mrf.mxu3 }
 0x113   :  { %v279_v63 = vmax.f32 %v276_v59, %v278_v60  ;;  %v243_v1 = vadd.f32 %v242_v62, %v220_v61 }
 0x115   :  { %v280_v3 = vrot.slane %v279_v63, 2  ;;  %v266_v4 = vadd.f32 %v265_v2, %v243_v1 }
 0x117   :  { %v277_v5 = vadd.f32 %v275_v55, %v266_v4  ;;  %v281_v7 = vmax.f32 %v279_v63, %v280_v3 }
 0x119   :  { %v284_v8 = vrot.slane %v277_v5, 4  ;;  %v282_v10 = vrot.slane %v281_v7, 1 }
 0x11b   :  { %v285_v9 = vmax.f32 %v277_v5, %v284_v8  ;;  %v283_v13 = vmax.f32 %v281_v7, %v282_v10 }
 0x11d   :  { %v286_v11 = vrot.slane %v285_v9, 2  ;;  %v294_v17 = vadd.f32 %v335_v15, %v283_v13 }
 0x11f   :  { %v287_v12 = vmax.f32 %v285_v9, %v286_v11  ;;  %v296_v20 = vmax.f32 %v294_v17, 0.0 }
 0x121   :  { %v288_v14 = vrot.slane %v287_v12, 1 }
 0x123   :  { %v289_v16 = vmax.f32 %v287_v12, %v288_v14 }
 0x125   :  { %v295_v18 = vadd.f32 %v335_v15, %v289_v16 }
 0x127   :  { %v297_v19 = vmax.f32 %v295_v18, 0.0 }
 0x129   :  { %v300_v21 = vrot.slane %v297_v19, 7 }
 0x12b   :  { %v302_v22 = vsel %vm301_vm11, %v300_v21, %v296_v20 }
 0x12c   :  { %304 = vst [vmem:[#allocation5] sm:$0x3] %v302_v22 }
 0x12d   :  { %315 = dma.vmem_to_hbm [thread:$0]  %s311_s5, 32, %s313_s8, [#allocation4]  }
 0x12e   :  { %386 = dma.done.wait [#allocation4], 32  }
 0x12f   :  { %387 = vsyncadd [#allocation4], 4294967264 }
 0x130   :  { %320 = vsyncpa [#allocation3], 1 }
 0x131   :  { %321 = vsyncpa [#allocation4], 1 }

</bundles_post_ra>
